<compile_context>
chip_gen: v7x
topology: tpu7x:2x2x1
jax: 0.10.0
libtpu: 0.0.40
codegen_flags: <defaults>
</compile_context>

<pallas_src>
import jax
import jax.numpy as jnp
from jax.experimental import pallas as pl
from jax.experimental.pallas import tpu as pltpu


# ----------------------------- Pallas kernel ------------------------------
def bilstm_linear_kernel(emb_ref,    # (T*B, E)      bf16
                         wih_ref,    # (E, 8H=256)   bf16  [fwd | bwd], g-scaled
                         sq_ref,     # (3, 4H, 4H)   bf16  [W_hh_wide | P_f | P_b]
                         bias_ref,   # (2, 8H)       f32   [gate bias | out bias (padded)]
                         out_ref):   # (B, 4H)       f32   feat in [0:2H), logits in [2H:2H+C)
    TB, _ = emb_ref.shape
    W = sq_ref.shape[1]          # 4H = 128 (one full lane row)
    H = W // 4
    B = out_ref.shape[0]
    T = TB // B

    b_gates = bias_ref[0:1, :]                     # (1, 2W) f32
    b_out = bias_ref[1:2, 0:W]                     # (1, W)  f32

    whh = sq_ref[0]                                # rows [3H:4H) = W_hh (g-scaled), rest 0
    p_f = sq_ref[1]                                # rows [3H:4H) = [I | 0 | w_lin_f | 0]
    p_b = sq_ref[2]                                # rows [3H:4H) = [0 | I | w_lin_b | 0]

    # Hoisted input projection for BOTH directions: one bf16 MXU matmul,
    # bias folded in so there is no per-step `+ b`.
    xproj = (jnp.dot(emb_ref[...], wih_ref[...],
                     preferred_element_type=jnp.float32) + b_gates)   # (T*B, 2W) f32

    # Lane-mask constants for the g-gate correction tanh(x) = 2*sigmoid(2x)-1
    # (the *2 pre-scale is folded into the g-gate weight/bias columns).
    # Built once, full-size, outside the recurrence loop.
    lane = jax.lax.broadcasted_iota(jnp.int32, (B, W), 1)
    in_g = jnp.logical_and(lane >= 2 * H, lane < 3 * H)
    gscale = jnp.where(in_g, 2.0, 1.0).astype(jnp.float32)
    gshift = jnp.where(in_g, -1.0, 0.0).astype(jnp.float32)

    def cell(gates, c_wide):
        # Full-lane-width gate math: i/f/g/o live in lane blocks 0..3,
        # c lives in block 1, h in block 3.  Alignment is done with rolls
        # (XLU) and a lane mask -- never with 32-lane slices.  Garbage lanes
        # stay bounded and are killed by zero weight rows in the matmuls.
        s = jax.nn.sigmoid(gates) * gscale + gshift                     # (B, W)
        c_new = s * c_wide + pltpu.roll(s, H, 1) * pltpu.roll(s, 3 * H, 1)
        h_new = s * pltpu.roll(jnp.tanh(c_new), 2 * H, 1)
        return h_new, c_new

    # ---- Forward recurrence, fully unrolled (T is a small static constant).
    h = jnp.zeros((B, W), jnp.float32)
    c = jnp.zeros((B, W), jnp.float32)
    for t in range(T):
        gates = (xproj[t * B:(t + 1) * B, 0:W]
                 + jnp.dot(h.astype(jnp.bfloat16), whh,
                           preferred_element_type=jnp.float32))
        h, c = cell(gates, c)
    h_fwd = h

    # ---- Backward direction at the last timestep: by PyTorch semantics this
    # is one cell step on x[T-1] with h0 = c0 = 0, so there is no W_hh term.
    gates_b = xproj[(T - 1) * B:T * B, W:2 * W]
    h_bwd, _ = cell(gates_b, jnp.zeros((B, W), jnp.float32))

    # ---- Single lane-dense (B, 128) store: feat | logits | zero padding.
    out_ref[...] = (jnp.dot(h_fwd.astype(jnp.bfloat16), p_f,
                            preferred_element_type=jnp.float32)
                    + jnp.dot(h_bwd.astype(jnp.bfloat16), p_b,
                              preferred_element_type=jnp.float32)
                    + b_out)


# ------------------------------ wrapper -----------------------------------
@jax.jit
def text_generator_forward(x_tokens, params):
    """x_tokens: int32 (B, T). Returns (lstm_out[:, -1, :], logits)."""
    emb_table = params["embedding"]                       # (V, E)
    B, T = x_tokens.shape
    H = params["w_hh_f"].shape[0]
    C = params["w_lin"].shape[1]
    W = 4 * H                                             # 128 -> full lane row

    # Pad batch up to the f32 sublane tile (8).  Padded rows use token 0
    # (padding_idx -> all-zero embedding); their outputs are sliced off.
    B_pad = max(8, ((B + 7) // 8) * 8)
    x_p = jnp.pad(x_tokens, ((0, B_pad - B), (0, 0)))

    # Gather embeddings in (T, B) order and pre-flatten to (T*B, E) so the
    # kernel never reshapes; cast matmul operands to bf16.
    emb_flat = jnp.take(emb_table, x_p.T.reshape(-1), axis=0).astype(jnp.bfloat16)

    # g-gate pre-scale so the kernel can use tanh(x) = 2*sigmoid(2x) - 1.
    gsc = jnp.concatenate([jnp.ones((1, H)), jnp.ones((1, H)),
                           jnp.full((1, H), 2.0), jnp.ones((1, H))],
                          axis=1).astype(jnp.float32)                  # (1, 4H)

    # Fused both-direction input projection: (E, 8H) weights, (1, 8H) bias.
    wih_wide = jnp.concatenate([params["w_ih_f"] * gsc,
                                params["w_ih_b"] * gsc],
                               axis=1).astype(jnp.bfloat16)            # (E, 2W)
    b_gates = jnp.concatenate([params["b_f"] * gsc,
                               params["b_b"] * gsc], axis=1)           # (1, 2W) f32

    # Recurrent weights lifted to full lane width: h lives in lane block 3.
    whh_wide = jnp.zeros((W, W), jnp.float32)
    whh_wide = whh_wide.at[3 * H:4 * H, :].set(params["w_hh_f"] * gsc)

    # Output projections (rows [3H:4H) map h -> feat lanes and logit lanes).
    eyeH = jnp.eye(H, dtype=jnp.float32)
    p_f = jnp.zeros((W, W), jnp.float32)
    p_f = p_f.at[3 * H:4 * H, 0:H].set(eyeH)
    p_f = p_f.at[3 * H:4 * H, 2 * H:2 * H + C].set(params["w_lin"][:H, :])
    p_b = jnp.zeros((W, W), jnp.float32)
    p_b = p_b.at[3 * H:4 * H, H:2 * H].set(eyeH)
    p_b = p_b.at[3 * H:4 * H, 2 * H:2 * H + C].set(params["w_lin"][H:, :])
    sq_slab = jnp.stack([whh_wide, p_f, p_b]).astype(jnp.bfloat16)     # (3, W, W)

    b_out = jnp.zeros((1, W), jnp.float32)
    b_out = b_out.at[:, 2 * H:2 * H + C].set(params["b_lin"])
    biases = jnp.concatenate([b_gates, jnp.pad(b_out, ((0, 0), (0, W)))],
                             axis=0)                                   # (2, 2W) f32

    vmem = pl.BlockSpec(memory_space=pltpu.MemorySpace.VMEM)
    out = pl.pallas_call(
        bilstm_linear_kernel,
        out_shape=jax.ShapeDtypeStruct((B_pad, W), jnp.float32),
        in_specs=[vmem, vmem, vmem, vmem],
        out_specs=vmem,
    )(emb_flat, wih_wide, sq_slab, biases)

    feat = out[:B, 0:2 * H]
    logits = out[:B, 2 * H:2 * H + C]
    return feat, logits


# --------------------------- parameter init --------------------------------
def init_params(key, vocab_size, embedding_dim, lstm_units, n_classes):
    E, H, C = embedding_dim, lstm_units, n_classes
    ks = jax.random.split(key, 11)
    klstm = 1.0 / jnp.sqrt(jnp.float32(H))
    klin = 1.0 / jnp.sqrt(jnp.float32(2 * H))

    def u(k, shape, bound):
        return jax.random.uniform(k, shape, jnp.float32, -bound, bound)

    def q(w):
        # Round to bf16-representable f32 so the kernel's bf16 MXU casts are
        # lossless w.r.t. the f32 reference.
        return w.astype(jnp.bfloat16).astype(jnp.float32)

    emb = q(jax.random.normal(ks[0], (vocab_size, E), jnp.float32))
    emb = emb.at[0].set(0.0)                               # padding_idx=0

    # Stored pre-transposed as (in_dim, 4H); biases b_ih + b_hh pre-summed.
    w_ih_f = q(u(ks[1], (E, 4 * H), klstm))
    w_hh_f = q(u(ks[2], (H, 4 * H), klstm))
    b_f = u(ks[3], (1, 4 * H), klstm) + u(ks[4], (1, 4 * H), klstm)
    w_ih_b = q(u(ks[5], (E, 4 * H), klstm))
    w_hh_b = q(u(ks[6], (H, 4 * H), klstm))
    b_b = u(ks[7], (1, 4 * H), klstm) + u(ks[8], (1, 4 * H), klstm)
    w_lin = q(u(ks[9], (2 * H, C), klin))
    b_lin = u(ks[10], (1, C), klin)

    return dict(embedding=emb,
                w_ih_f=w_ih_f, w_hh_f=w_hh_f, b_f=b_f,
                w_ih_b=w_ih_b, w_hh_b=w_hh_b, b_b=b_b,
                w_lin=w_lin, b_lin=b_lin)


# ------------------------- pure-JAX reference -------------------------------
def reference_forward(x_tokens, params):
    emb = jnp.take(params["embedding"], x_tokens, axis=0)   # (B, T, E)
    B, T, E = emb.shape
    H = params["w_hh_f"].shape[0]

    def cell(x_t, h, c, wih, whh, b):
        g = x_t @ wih + h @ whh + b
        i = jax.nn.sigmoid(g[:, :H])
        f = jax.nn.sigmoid(g[:, H:2 * H])
        gg = jnp.tanh(g[:, 2 * H:3 * H])
        o = jax.nn.sigmoid(g[:, 3 * H:])
        c = f * c + i * gg
        return o * jnp.tanh(c), c

    h = jnp.zeros((B, H)); c = jnp.zeros((B, H))
    for t in range(T):
        h, c = cell(emb[:, t], h, c,
                    params["w_ih_f"], params["w_hh_f"], params["b_f"])
    # Backward direction's output at position T-1 == one cell step on x[T-1]
    # from zero state (the reverse-time recurrence processes t=T-1 first).
    hb, _ = cell(emb[:, T - 1], jnp.zeros((B, H)), jnp.zeros((B, H)),
                 params["w_ih_b"], params["w_hh_b"], params["b_b"])
    feat = jnp.concatenate([h, hb], axis=-1)
    return feat, feat @ params["w_lin"] + params["b_lin"]


if __name__ == "__main__":
    VOCAB, EMB, HID, NCLS = 50, 32, 32, 8
    B, T = 2, 8

    key = jax.random.PRNGKey(0)
    kp, kx = jax.random.split(key)
    params = init_params(kp, VOCAB, EMB, HID, NCLS)
    x = jax.random.randint(kx, (B, T), 0, VOCAB, dtype=jnp.int32)

    feat, logits = text_generator_forward(x, params)
    jax.block_until_ready((feat, logits))

    feat_ref, logits_ref = reference_forward(x, params)
    assert feat.shape == (B, 2 * HID) and logits.shape == (B, NCLS)
    # bf16 MXU operands (per perf review) introduce small per-step rounding of
    # the recurrent h; tolerances sized for that mixed-precision deviation.
    assert jnp.allclose(feat, feat_ref, rtol=3e-2, atol=3e-2)
    assert jnp.allclose(logits, logits_ref, rtol=3e-2, atol=3e-2)

    print("KERNEL_OK")
</pallas_src>

<mosaic_0001>
module attributes {stable_mosaic.version = 11 : i64} {
  func.func @bilstm_linear_kernel(%arg0: memref<64x32xbf16, #tpu.memory_space<vmem>>, %arg1: memref<32x256xbf16, #tpu.memory_space<vmem>>, %arg2: memref<3x128x128xbf16, #tpu.memory_space<vmem>>, %arg3: memref<2x256xf32, #tpu.memory_space<vmem>>, %arg4: memref<8x128xf32, #tpu.memory_space<vmem>>) attributes {dimension_semantics = [], scalar_prefetch = 0 : i64, scratch_operands = 0 : i64, tpu.core_type = #tpu.core_type<tc>} {
    %c0 = arith.constant 0 : index
    %c0_0 = arith.constant 0 : index
    %0 = vector.load %arg3[%c0, %c0_0] : memref<2x256xf32, #tpu.memory_space<vmem>>, vector<1x256xf32>
    %c1 = arith.constant 1 : index
    %c0_1 = arith.constant 0 : index
    %1 = vector.load %arg3[%c1, %c0_1] : memref<2x256xf32, #tpu.memory_space<vmem>>, vector<1x128xf32>
    %c0_2 = arith.constant 0 : index
    %c0_3 = arith.constant 0 : index
    %c0_4 = arith.constant 0 : index
    %2 = vector.load %arg2[%c0_2, %c0_3, %c0_4] : memref<3x128x128xbf16, #tpu.memory_space<vmem>>, vector<1x128x128xbf16>
    %3 = vector.shape_cast %2 : vector<1x128x128xbf16> to vector<128x128xbf16>
    %c1_5 = arith.constant 1 : index
    %c0_6 = arith.constant 0 : index
    %c0_7 = arith.constant 0 : index
    %4 = vector.load %arg2[%c1_5, %c0_6, %c0_7] : memref<3x128x128xbf16, #tpu.memory_space<vmem>>, vector<1x128x128xbf16>
    %5 = vector.shape_cast %4 : vector<1x128x128xbf16> to vector<128x128xbf16>
    %c2 = arith.constant 2 : index
    %c0_8 = arith.constant 0 : index
    %c0_9 = arith.constant 0 : index
    %6 = vector.load %arg2[%c2, %c0_8, %c0_9] : memref<3x128x128xbf16, #tpu.memory_space<vmem>>, vector<1x128x128xbf16>
    %7 = vector.shape_cast %6 : vector<1x128x128xbf16> to vector<128x128xbf16>
    %c0_10 = arith.constant 0 : index
    %c0_11 = arith.constant 0 : index
    %8 = vector.load %arg0[%c0_10, %c0_11] : memref<64x32xbf16, #tpu.memory_space<vmem>>, vector<64x32xbf16>
    %c0_12 = arith.constant 0 : index
    %c0_13 = arith.constant 0 : index
    %9 = vector.load %arg1[%c0_12, %c0_13] : memref<32x256xbf16, #tpu.memory_space<vmem>>, vector<32x256xbf16>
    %cst = arith.constant dense<0.000000e+00> : vector<64x256xf32>
    %10 = tpu.matmul %8, %9, %cst {dimension_numbers = #tpu.dot_dimension_numbers<[1], [0], [0], [1], [0, 0, 1, 1], [], []>} : vector<64x32xbf16>, vector<32x256xbf16>, vector<64x256xf32> -> vector<64x256xf32>
    %11 = vector.broadcast %0 : vector<1x256xf32> to vector<64x256xf32>
    %12 = arith.addf %10, %11 : vector<64x256xf32>
    %13 = tpu.iota {dimensions = array<i32: 1>} : vector<8x128xi32>
    %c64_i32 = arith.constant 64 : i32
    %14 = vector.broadcast %c64_i32 : i32 to vector<8x128xi32>
    %15 = arith.cmpi sge, %13, %14 : vector<8x128xi32>
    %c96_i32 = arith.constant 96 : i32
    %16 = vector.broadcast %c96_i32 : i32 to vector<8x128xi32>
    %17 = arith.cmpi slt, %13, %16 : vector<8x128xi32>
    %18 = arith.andi %15, %17 : vector<8x128xi1>
    %cst_14 = arith.constant 2.000000e+00 : f32
    %cst_15 = arith.constant 1.000000e+00 : f32
    %19 = vector.broadcast %cst_14 : f32 to vector<8x128xf32>
    %20 = vector.broadcast %cst_15 : f32 to vector<8x128xf32>
    %21 = arith.select %18, %19, %20 : vector<8x128xi1>, vector<8x128xf32>
    %cst_16 = arith.constant -1.000000e+00 : f32
    %cst_17 = arith.constant 0.000000e+00 : f32
    %22 = vector.broadcast %cst_16 : f32 to vector<8x128xf32>
    %23 = vector.broadcast %cst_17 : f32 to vector<8x128xf32>
    %24 = arith.select %18, %22, %23 : vector<8x128xi1>, vector<8x128xf32>
    %cst_18 = arith.constant 0.000000e+00 : f32
    %25 = vector.broadcast %cst_18 : f32 to vector<8x128xf32>
    %cst_19 = arith.constant 0.000000e+00 : f32
    %26 = vector.broadcast %cst_19 : f32 to vector<8x128xf32>
    %27 = vector.extract_strided_slice %12 {offsets = [0, 0], sizes = [8, 128], strides = [1, 1]} : vector<64x256xf32> to vector<8x128xf32>
    %28 = arith.truncf %25 : vector<8x128xf32> to vector<8x128xbf16>
    %cst_20 = arith.constant dense<0.000000e+00> : vector<8x128xf32>
    %29 = tpu.matmul %28, %3, %cst_20 {dimension_numbers = #tpu.dot_dimension_numbers<[1], [0], [0], [1], [0, 0, 1, 1], [], []>} : vector<8x128xbf16>, vector<128x128xbf16>, vector<8x128xf32> -> vector<8x128xf32>
    %30 = arith.addf %27, %29 : vector<8x128xf32>
    %31 = arith.negf %30 : vector<8x128xf32>
    %32 = math.exp %31 : vector<8x128xf32>
    %cst_21 = arith.constant 1.000000e+00 : f32
    %33 = vector.broadcast %cst_21 : f32 to vector<8x128xf32>
    %34 = arith.addf %33, %32 : vector<8x128xf32>
    %35 = arith.divf %33, %34 : vector<8x128xf32>
    %36 = arith.mulf %35, %21 : vector<8x128xf32>
    %37 = arith.addf %36, %24 : vector<8x128xf32>
    %38 = arith.mulf %37, %26 : vector<8x128xf32>
    %c32_i32 = arith.constant 32 : i32
    %39 = tpu.dynamic_rotate %37 by %c32_i32 dim 1 : vector<8x128xf32>, i32 -> vector<8x128xf32>
    %c96_i32_22 = arith.constant 96 : i32
    %40 = tpu.dynamic_rotate %37 by %c96_i32_22 dim 1 : vector<8x128xf32>, i32 -> vector<8x128xf32>
    %41 = arith.mulf %39, %40 : vector<8x128xf32>
    %42 = arith.addf %38, %41 : vector<8x128xf32>
    %43 = math.tanh %42 : vector<8x128xf32>
    %c64_i32_23 = arith.constant 64 : i32
    %44 = tpu.dynamic_rotate %43 by %c64_i32_23 dim 1 : vector<8x128xf32>, i32 -> vector<8x128xf32>
    %45 = arith.mulf %37, %44 : vector<8x128xf32>
    %46 = vector.extract_strided_slice %12 {offsets = [8, 0], sizes = [8, 128], strides = [1, 1]} : vector<64x256xf32> to vector<8x128xf32>
    %47 = arith.truncf %45 : vector<8x128xf32> to vector<8x128xbf16>
    %cst_24 = arith.constant dense<0.000000e+00> : vector<8x128xf32>
    %48 = tpu.matmul %47, %3, %cst_24 {dimension_numbers = #tpu.dot_dimension_numbers<[1], [0], [0], [1], [0, 0, 1, 1], [], []>} : vector<8x128xbf16>, vector<128x128xbf16>, vector<8x128xf32> -> vector<8x128xf32>
    %49 = arith.addf %46, %48 : vector<8x128xf32>
    %50 = arith.negf %49 : vector<8x128xf32>
    %51 = math.exp %50 : vector<8x128xf32>
    %cst_25 = arith.constant 1.000000e+00 : f32
    %52 = vector.broadcast %cst_25 : f32 to vector<8x128xf32>
    %53 = arith.addf %52, %51 : vector<8x128xf32>
    %54 = arith.divf %52, %53 : vector<8x128xf32>
    %55 = arith.mulf %54, %21 : vector<8x128xf32>
    %56 = arith.addf %55, %24 : vector<8x128xf32>
    %57 = arith.mulf %56, %42 : vector<8x128xf32>
    %c32_i32_26 = arith.constant 32 : i32
    %58 = tpu.dynamic_rotate %56 by %c32_i32_26 dim 1 : vector<8x128xf32>, i32 -> vector<8x128xf32>
    %c96_i32_27 = arith.constant 96 : i32
    %59 = tpu.dynamic_rotate %56 by %c96_i32_27 dim 1 : vector<8x128xf32>, i32 -> vector<8x128xf32>
    %60 = arith.mulf %58, %59 : vector<8x128xf32>
    %61 = arith.addf %57, %60 : vector<8x128xf32>
    %62 = math.tanh %61 : vector<8x128xf32>
    %c64_i32_28 = arith.constant 64 : i32
    %63 = tpu.dynamic_rotate %62 by %c64_i32_28 dim 1 : vector<8x128xf32>, i32 -> vector<8x128xf32>
    %64 = arith.mulf %56, %63 : vector<8x128xf32>
    %65 = vector.extract_strided_slice %12 {offsets = [16, 0], sizes = [8, 128], strides = [1, 1]} : vector<64x256xf32> to vector<8x128xf32>
    %66 = arith.truncf %64 : vector<8x128xf32> to vector<8x128xbf16>
    %cst_29 = arith.constant dense<0.000000e+00> : vector<8x128xf32>
    %67 = tpu.matmul %66, %3, %cst_29 {dimension_numbers = #tpu.dot_dimension_numbers<[1], [0], [0], [1], [0, 0, 1, 1], [], []>} : vector<8x128xbf16>, vector<128x128xbf16>, vector<8x128xf32> -> vector<8x128xf32>
    %68 = arith.addf %65, %67 : vector<8x128xf32>
    %69 = arith.negf %68 : vector<8x128xf32>
    %70 = math.exp %69 : vector<8x128xf32>
    %cst_30 = arith.constant 1.000000e+00 : f32
    %71 = vector.broadcast %cst_30 : f32 to vector<8x128xf32>
    %72 = arith.addf %71, %70 : vector<8x128xf32>
    %73 = arith.divf %71, %72 : vector<8x128xf32>
    %74 = arith.mulf %73, %21 : vector<8x128xf32>
    %75 = arith.addf %74, %24 : vector<8x128xf32>
    %76 = arith.mulf %75, %61 : vector<8x128xf32>
    %c32_i32_31 = arith.constant 32 : i32
    %77 = tpu.dynamic_rotate %75 by %c32_i32_31 dim 1 : vector<8x128xf32>, i32 -> vector<8x128xf32>
    %c96_i32_32 = arith.constant 96 : i32
    %78 = tpu.dynamic_rotate %75 by %c96_i32_32 dim 1 : vector<8x128xf32>, i32 -> vector<8x128xf32>
    %79 = arith.mulf %77, %78 : vector<8x128xf32>
    %80 = arith.addf %76, %79 : vector<8x128xf32>
    %81 = math.tanh %80 : vector<8x128xf32>
    %c64_i32_33 = arith.constant 64 : i32
    %82 = tpu.dynamic_rotate %81 by %c64_i32_33 dim 1 : vector<8x128xf32>, i32 -> vector<8x128xf32>
    %83 = arith.mulf %75, %82 : vector<8x128xf32>
    %84 = vector.extract_strided_slice %12 {offsets = [24, 0], sizes = [8, 128], strides = [1, 1]} : vector<64x256xf32> to vector<8x128xf32>
    %85 = arith.truncf %83 : vector<8x128xf32> to vector<8x128xbf16>
    %cst_34 = arith.constant dense<0.000000e+00> : vector<8x128xf32>
    %86 = tpu.matmul %85, %3, %cst_34 {dimension_numbers = #tpu.dot_dimension_numbers<[1], [0], [0], [1], [0, 0, 1, 1], [], []>} : vector<8x128xbf16>, vector<128x128xbf16>, vector<8x128xf32> -> vector<8x128xf32>
    %87 = arith.addf %84, %86 : vector<8x128xf32>
    %88 = arith.negf %87 : vector<8x128xf32>
    %89 = math.exp %88 : vector<8x128xf32>
    %cst_35 = arith.constant 1.000000e+00 : f32
    %90 = vector.broadcast %cst_35 : f32 to vector<8x128xf32>
    %91 = arith.addf %90, %89 : vector<8x128xf32>
    %92 = arith.divf %90, %91 : vector<8x128xf32>
    %93 = arith.mulf %92, %21 : vector<8x128xf32>
    %94 = arith.addf %93, %24 : vector<8x128xf32>
    %95 = arith.mulf %94, %80 : vector<8x128xf32>
    %c32_i32_36 = arith.constant 32 : i32
    %96 = tpu.dynamic_rotate %94 by %c32_i32_36 dim 1 : vector<8x128xf32>, i32 -> vector<8x128xf32>
    %c96_i32_37 = arith.constant 96 : i32
    %97 = tpu.dynamic_rotate %94 by %c96_i32_37 dim 1 : vector<8x128xf32>, i32 -> vector<8x128xf32>
    %98 = arith.mulf %96, %97 : vector<8x128xf32>
    %99 = arith.addf %95, %98 : vector<8x128xf32>
    %100 = math.tanh %99 : vector<8x128xf32>
    %c64_i32_38 = arith.constant 64 : i32
    %101 = tpu.dynamic_rotate %100 by %c64_i32_38 dim 1 : vector<8x128xf32>, i32 -> vector<8x128xf32>
    %102 = arith.mulf %94, %101 : vector<8x128xf32>
    %103 = vector.extract_strided_slice %12 {offsets = [32, 0], sizes = [8, 128], strides = [1, 1]} : vector<64x256xf32> to vector<8x128xf32>
    %104 = arith.truncf %102 : vector<8x128xf32> to vector<8x128xbf16>
    %cst_39 = arith.constant dense<0.000000e+00> : vector<8x128xf32>
    %105 = tpu.matmul %104, %3, %cst_39 {dimension_numbers = #tpu.dot_dimension_numbers<[1], [0], [0], [1], [0, 0, 1, 1], [], []>} : vector<8x128xbf16>, vector<128x128xbf16>, vector<8x128xf32> -> vector<8x128xf32>
    %106 = arith.addf %103, %105 : vector<8x128xf32>
    %107 = arith.negf %106 : vector<8x128xf32>
    %108 = math.exp %107 : vector<8x128xf32>
    %cst_40 = arith.constant 1.000000e+00 : f32
    %109 = vector.broadcast %cst_40 : f32 to vector<8x128xf32>
    %110 = arith.addf %109, %108 : vector<8x128xf32>
    %111 = arith.divf %109, %110 : vector<8x128xf32>
    %112 = arith.mulf %111, %21 : vector<8x128xf32>
    %113 = arith.addf %112, %24 : vector<8x128xf32>
    %114 = arith.mulf %113, %99 : vector<8x128xf32>
    %c32_i32_41 = arith.constant 32 : i32
    %115 = tpu.dynamic_rotate %113 by %c32_i32_41 dim 1 : vector<8x128xf32>, i32 -> vector<8x128xf32>
    %c96_i32_42 = arith.constant 96 : i32
    %116 = tpu.dynamic_rotate %113 by %c96_i32_42 dim 1 : vector<8x128xf32>, i32 -> vector<8x128xf32>
    %117 = arith.mulf %115, %116 : vector<8x128xf32>
    %118 = arith.addf %114, %117 : vector<8x128xf32>
    %119 = math.tanh %118 : vector<8x128xf32>
    %c64_i32_43 = arith.constant 64 : i32
    %120 = tpu.dynamic_rotate %119 by %c64_i32_43 dim 1 : vector<8x128xf32>, i32 -> vector<8x128xf32>
    %121 = arith.mulf %113, %120 : vector<8x128xf32>
    %122 = vector.extract_strided_slice %12 {offsets = [40, 0], sizes = [8, 128], strides = [1, 1]} : vector<64x256xf32> to vector<8x128xf32>
    %123 = arith.truncf %121 : vector<8x128xf32> to vector<8x128xbf16>
    %cst_44 = arith.constant dense<0.000000e+00> : vector<8x128xf32>
    %124 = tpu.matmul %123, %3, %cst_44 {dimension_numbers = #tpu.dot_dimension_numbers<[1], [0], [0], [1], [0, 0, 1, 1], [], []>} : vector<8x128xbf16>, vector<128x128xbf16>, vector<8x128xf32> -> vector<8x128xf32>
    %125 = arith.addf %122, %124 : vector<8x128xf32>
    %126 = arith.negf %125 : vector<8x128xf32>
    %127 = math.exp %126 : vector<8x128xf32>
    %cst_45 = arith.constant 1.000000e+00 : f32
    %128 = vector.broadcast %cst_45 : f32 to vector<8x128xf32>
    %129 = arith.addf %128, %127 : vector<8x128xf32>
    %130 = arith.divf %128, %129 : vector<8x128xf32>
    %131 = arith.mulf %130, %21 : vector<8x128xf32>
    %132 = arith.addf %131, %24 : vector<8x128xf32>
    %133 = arith.mulf %132, %118 : vector<8x128xf32>
    %c32_i32_46 = arith.constant 32 : i32
    %134 = tpu.dynamic_rotate %132 by %c32_i32_46 dim 1 : vector<8x128xf32>, i32 -> vector<8x128xf32>
    %c96_i32_47 = arith.constant 96 : i32
    %135 = tpu.dynamic_rotate %132 by %c96_i32_47 dim 1 : vector<8x128xf32>, i32 -> vector<8x128xf32>
    %136 = arith.mulf %134, %135 : vector<8x128xf32>
    %137 = arith.addf %133, %136 : vector<8x128xf32>
    %138 = math.tanh %137 : vector<8x128xf32>
    %c64_i32_48 = arith.constant 64 : i32
    %139 = tpu.dynamic_rotate %138 by %c64_i32_48 dim 1 : vector<8x128xf32>, i32 -> vector<8x128xf32>
    %140 = arith.mulf %132, %139 : vector<8x128xf32>
    %141 = vector.extract_strided_slice %12 {offsets = [48, 0], sizes = [8, 128], strides = [1, 1]} : vector<64x256xf32> to vector<8x128xf32>
    %142 = arith.truncf %140 : vector<8x128xf32> to vector<8x128xbf16>
    %cst_49 = arith.constant dense<0.000000e+00> : vector<8x128xf32>
    %143 = tpu.matmul %142, %3, %cst_49 {dimension_numbers = #tpu.dot_dimension_numbers<[1], [0], [0], [1], [0, 0, 1, 1], [], []>} : vector<8x128xbf16>, vector<128x128xbf16>, vector<8x128xf32> -> vector<8x128xf32>
    %144 = arith.addf %141, %143 : vector<8x128xf32>
    %145 = arith.negf %144 : vector<8x128xf32>
    %146 = math.exp %145 : vector<8x128xf32>
    %cst_50 = arith.constant 1.000000e+00 : f32
    %147 = vector.broadcast %cst_50 : f32 to vector<8x128xf32>
    %148 = arith.addf %147, %146 : vector<8x128xf32>
    %149 = arith.divf %147, %148 : vector<8x128xf32>
    %150 = arith.mulf %149, %21 : vector<8x128xf32>
    %151 = arith.addf %150, %24 : vector<8x128xf32>
    %152 = arith.mulf %151, %137 : vector<8x128xf32>
    %c32_i32_51 = arith.constant 32 : i32
    %153 = tpu.dynamic_rotate %151 by %c32_i32_51 dim 1 : vector<8x128xf32>, i32 -> vector<8x128xf32>
    %c96_i32_52 = arith.constant 96 : i32
    %154 = tpu.dynamic_rotate %151 by %c96_i32_52 dim 1 : vector<8x128xf32>, i32 -> vector<8x128xf32>
    %155 = arith.mulf %153, %154 : vector<8x128xf32>
    %156 = arith.addf %152, %155 : vector<8x128xf32>
    %157 = math.tanh %156 : vector<8x128xf32>
    %c64_i32_53 = arith.constant 64 : i32
    %158 = tpu.dynamic_rotate %157 by %c64_i32_53 dim 1 : vector<8x128xf32>, i32 -> vector<8x128xf32>
    %159 = arith.mulf %151, %158 : vector<8x128xf32>
    %160 = vector.extract_strided_slice %12 {offsets = [56, 0], sizes = [8, 128], strides = [1, 1]} : vector<64x256xf32> to vector<8x128xf32>
    %161 = arith.truncf %159 : vector<8x128xf32> to vector<8x128xbf16>
    %cst_54 = arith.constant dense<0.000000e+00> : vector<8x128xf32>
    %162 = tpu.matmul %161, %3, %cst_54 {dimension_numbers = #tpu.dot_dimension_numbers<[1], [0], [0], [1], [0, 0, 1, 1], [], []>} : vector<8x128xbf16>, vector<128x128xbf16>, vector<8x128xf32> -> vector<8x128xf32>
    %163 = arith.addf %160, %162 : vector<8x128xf32>
    %164 = arith.negf %163 : vector<8x128xf32>
    %165 = math.exp %164 : vector<8x128xf32>
    %cst_55 = arith.constant 1.000000e+00 : f32
    %166 = vector.broadcast %cst_55 : f32 to vector<8x128xf32>
    %167 = arith.addf %166, %165 : vector<8x128xf32>
    %168 = arith.divf %166, %167 : vector<8x128xf32>
    %169 = arith.mulf %168, %21 : vector<8x128xf32>
    %170 = arith.addf %169, %24 : vector<8x128xf32>
    %171 = arith.mulf %170, %156 : vector<8x128xf32>
    %c32_i32_56 = arith.constant 32 : i32
    %172 = tpu.dynamic_rotate %170 by %c32_i32_56 dim 1 : vector<8x128xf32>, i32 -> vector<8x128xf32>
    %c96_i32_57 = arith.constant 96 : i32
    %173 = tpu.dynamic_rotate %170 by %c96_i32_57 dim 1 : vector<8x128xf32>, i32 -> vector<8x128xf32>
    %174 = arith.mulf %172, %173 : vector<8x128xf32>
    %175 = arith.addf %171, %174 : vector<8x128xf32>
    %176 = math.tanh %175 : vector<8x128xf32>
    %c64_i32_58 = arith.constant 64 : i32
    %177 = tpu.dynamic_rotate %176 by %c64_i32_58 dim 1 : vector<8x128xf32>, i32 -> vector<8x128xf32>
    %178 = arith.mulf %170, %177 : vector<8x128xf32>
    %179 = vector.extract_strided_slice %12 {offsets = [56, 128], sizes = [8, 128], strides = [1, 1]} : vector<64x256xf32> to vector<8x128xf32>
    %cst_59 = arith.constant 0.000000e+00 : f32
    %180 = vector.broadcast %cst_59 : f32 to vector<8x128xf32>
    %181 = arith.negf %179 : vector<8x128xf32>
    %182 = math.exp %181 : vector<8x128xf32>
    %cst_60 = arith.constant 1.000000e+00 : f32
    %183 = vector.broadcast %cst_60 : f32 to vector<8x128xf32>
    %184 = arith.addf %183, %182 : vector<8x128xf32>
    %185 = arith.divf %183, %184 : vector<8x128xf32>
    %186 = arith.mulf %185, %21 : vector<8x128xf32>
    %187 = arith.addf %186, %24 : vector<8x128xf32>
    %188 = arith.mulf %187, %180 : vector<8x128xf32>
    %c32_i32_61 = arith.constant 32 : i32
    %189 = tpu.dynamic_rotate %187 by %c32_i32_61 dim 1 : vector<8x128xf32>, i32 -> vector<8x128xf32>
    %c96_i32_62 = arith.constant 96 : i32
    %190 = tpu.dynamic_rotate %187 by %c96_i32_62 dim 1 : vector<8x128xf32>, i32 -> vector<8x128xf32>
    %191 = arith.mulf %189, %190 : vector<8x128xf32>
    %192 = arith.addf %188, %191 : vector<8x128xf32>
    %193 = math.tanh %192 : vector<8x128xf32>
    %c64_i32_63 = arith.constant 64 : i32
    %194 = tpu.dynamic_rotate %193 by %c64_i32_63 dim 1 : vector<8x128xf32>, i32 -> vector<8x128xf32>
    %195 = arith.mulf %187, %194 : vector<8x128xf32>
    %196 = arith.truncf %178 : vector<8x128xf32> to vector<8x128xbf16>
    %cst_64 = arith.constant dense<0.000000e+00> : vector<8x128xf32>
    %197 = tpu.matmul %196, %5, %cst_64 {dimension_numbers = #tpu.dot_dimension_numbers<[1], [0], [0], [1], [0, 0, 1, 1], [], []>} : vector<8x128xbf16>, vector<128x128xbf16>, vector<8x128xf32> -> vector<8x128xf32>
    %198 = arith.truncf %195 : vector<8x128xf32> to vector<8x128xbf16>
    %cst_65 = arith.constant dense<0.000000e+00> : vector<8x128xf32>
    %199 = tpu.matmul %198, %7, %cst_65 {dimension_numbers = #tpu.dot_dimension_numbers<[1], [0], [0], [1], [0, 0, 1, 1], [], []>} : vector<8x128xbf16>, vector<128x128xbf16>, vector<8x128xf32> -> vector<8x128xf32>
    %200 = arith.addf %197, %199 : vector<8x128xf32>
    %201 = vector.broadcast %1 : vector<1x128xf32> to vector<8x128xf32>
    %202 = arith.addf %200, %201 : vector<8x128xf32>
    %c0_66 = arith.constant 0 : index
    %c0_67 = arith.constant 0 : index
    %203 = vector.load %arg4[%c0_66, %c0_67] : memref<8x128xf32, #tpu.memory_space<vmem>>, vector<8x128xf32>
    tpu.vector_store %arg4[%c0_66, %c0_67], %202 {strides = array<i32>} : memref<8x128xf32, #tpu.memory_space<vmem>>, vector<8x128xf32>,
    return
  }
}

</mosaic_0001>

<bundles_post_ra>
// kernel: text_generator_forward.1
= control target key start
LH: loop header
LB: loop body
LE: loop exit
PB: predicated region body
PF: predicated region fallthrough
CT: control target
= control target key end

     0   :  { %v1424_v0 = vmov 0.0   ;;  %v1425_v2 = vmov 0   ;;  %vm1426_vm0 = vmmov 0   ;;  %vm133_vm1 = vcmask 261120   ;;  %s1428_s16 = smov 32   ;;  %s1429_s17 = smov 96   ;;  %s1858_s2 = inlined_call_operand.vmem [shape: bf16[3,128,128], index: 2, kind: input, shape index: {}]   ;;  %s1859_s1 = inlined_call_operand.vmem [shape: bf16[32,256], index: 1, kind: input, shape index: {}]   ;;  %s1860_s0 = inlined_call_operand.vmem [shape: bf16[64,32], index: 0, kind: input, shape index: {}]   ;;  %s1861_s3 = inlined_call_operand.vmem [shape: f32[2,256], index: 3, kind: input, shape index: {}]   ;;  %s1862_s4 = inlined_call_operand.vmem [shape: f32[8,128], index: 4, kind: output, shape index: {}]  }
   0x1   :  { %1129 = vmatprep.subr.bf16.mxu1 %v1424_v0  ;;  %v1460_v1 = vld [vmem:[%s1858_s2] sm:$0xff]   ;;  %178 = vmatprep.mubr.bf16.mxu0 %v1425_v2  ;;  %v1469_v3 = vld [vmem:[%s1858_s2 + $0x8] sm:$0xff]   ;;  %v1475_v4 = vld [vmem:[%s1858_s2 + $0x10] sm:$0xff]   ;;  %v83_v15 = vlaneseq  ;;  %v1427_v34 = vmov 1.0   ;;  %s1430_s24 = smov 64  }
   0x2   :  { %1145 = vmatprep.mubr.msk.bf16.mxu1 %vm1426_vm0, %v1424_v0  ;;  %1130 = vmatpush3.bf16.msra.mxu1 %v1460_v1  ;;  %v1341_v5 = vld [vmem:[%s1859_s1 + $0x4] ss:$8 sps:$4 sm:$0xff]   ;;  %v1343_v6 = vld [vmem:[%s1859_s1] ss:$8 sps:$4 sm:$0xff]   ;;  %v1345_v7 = vld [vmem:[%s1859_s1 + $0x14] ss:$8 sps:$4 sm:$0xff]  }
   0x3   :  { %1131 = vmatprep.subr.bf16.mxu1 %v1424_v0  ;;  %146 = vmatprep.subr.bf16.mxu0 %v1341_v5  ;;  %v1347_v8 = vld [vmem:[%s1859_s1 + $0x10] ss:$8 sps:$4 sm:$0xff]   ;;  %v1349_v10 = vld [vmem:[%s1860_s0] sm:$0xff]   ;;  %v1513_v12 = vld [vmem:[%s1858_s2 + $0x28] sm:$0xff]   ;;  %v1571_v19 = vshrl.u32 %v83_v15, 7  ;;  %v213_v33 = vand.u32 127, %v83_v15 }
   0x4   :  { %147 = vmatpush1.bf16.msra.mxu0 %v1343_v6  ;;  %v1495_v9 = vld [vmem:[%s1858_s2 + $0x18] sm:$0xff]   ;;  %v1504_v11 = vld [vmem:[%s1858_s2 + $0x20] sm:$0xff]   ;;  %v1523_v13 = vld [vmem:[%s1858_s2 + $0x30] sm:$0xff]  }
   0x5   :  { %148 = vmatprep.subr.bf16.mxu0 %v1345_v7  ;;  %v1535_v14 = vld [vmem:[%s1858_s2 + $0x38] sm:$0xff]   ;;  %v85_v21 = vsub.s32 0, %v1571_v19  ;;  %v1577_v22 = vld [vmem:[%s1861_s3] ss:$2 sm:$0x3]  ;;  %vm214_vm2 = vcmp.ge.s32.totalorder %v213_v33, 64 }
   0x6   :  { %1132 = vmatpush3.bf16.msra.mxu1 %v1469_v3  ;;  %vm215_vm3 = vcmp.lt.s32.totalorder %v213_v33, 96  ;;  %v1351_v40 = vld [vmem:[%s1860_s0 + $0x8] sm:$0xff]   ;;  %v1352_v41 = vld [vmem:[%s1860_s0 + $0x10] sm:$0xff]   ;;  %v1353_v42 = vld [vmem:[%s1860_s0 + $0x18] sm:$0xff]  }
   0x7   :  { %1133 = vmatprep.subr.bf16.mxu1 %v1424_v0  ;;  %v1580_v23 = vrot.slane %v1577_v22, %v85_v21  ;;  %vm216_vm4 = vmand %vm214_vm2, %vm215_vm3 }
   0x8   :  { %149 = vmatpush1.bf16.msra.mxu0 %v1347_v8  ;;  %v1583_v35 = vsel %vm216_vm4, 2.0, %v1427_v34  ;;  %v1586_v37 = vsel %vm216_vm4, -1.0, %v1424_v0 }
   0x9   :  { %1149 = vmatprep.subr.bf16.mxu0 %v1424_v0 }
   0xa   :  { %1134 = vmatpush3.bf16.msra.mxu1 %v1475_v4 }
   0xb   :  { %1135 = vmatprep.subr.bf16.mxu1 %v1424_v0  ;;  %1001 = vmatmul.mubr.msk.bf16.vlgmr.msra.gmra.mrb[0].mxu0 %vm133_vm1, %v1349_v10 }
   0xc   :  { %1150 = vmatpush3.bf16.msra.mxu0 %v1460_v1  ;;  %186 = vmatprep.mubr.bf16.mxu0 %v1425_v2 }
   0xd   :  { %1151 = vmatprep.subr.bf16.mxu0 %v1424_v0 }
   0xe   :  { %1136 = vmatpush3.bf16.msra.mxu1 %v1495_v9 }
   0xf   :  { %1137 = vmatprep.subr.bf16.mxu1 %v1424_v0 }
  0x10   :  { %1152 = vmatpush3.bf16.msra.mxu0 %v1469_v3 }
  0x11   :  { %1153 = vmatprep.subr.bf16.mxu0 %v1424_v0 }
  0x12   :  { %1138 = vmatpush3.bf16.msra.mxu1 %v1504_v11 }
  0x13   :  { %1139 = vmatprep.subr.bf16.mxu1 %v1424_v0  ;;  %1002 = vmatmul.mubr.msk.bf16.gmra.mrb[4].mxu0 %vm133_vm1, %v1351_v40 }
  0x14   :  { %1154 = vmatpush3.bf16.msra.mxu0 %v1475_v4  ;;  %194 = vmatprep.mubr.bf16.mxu0 %v1425_v2 }
  0x15   :  { %1155 = vmatprep.subr.bf16.mxu0 %v1424_v0 }
  0x16   :  { %1140 = vmatpush3.bf16.msra.mxu1 %v1513_v12 }
  0x17   :  { %1141 = vmatprep.subr.bf16.mxu1 %v1424_v0 }
  0x18   :  { %1156 = vmatpush3.bf16.msra.mxu0 %v1495_v9 }
  0x19   :  { %1157 = vmatprep.subr.bf16.mxu0 %v1424_v0 }
  0x1a   :  { %1142 = vmatpush3.bf16.msra.mxu1 %v1523_v13 }
  0x1b   :  { %1143 = vmatprep.subr.bf16.mxu1 %v1424_v0  ;;  %1003 = vmatmul.mubr.msk.bf16.gmra.mrb[8].mxu0 %vm133_vm1, %v1352_v41 }
  0x1c   :  { %1158 = vmatpush3.bf16.msra.mxu0 %v1504_v11  ;;  %202 = vmatprep.mubr.bf16.mxu0 %v1425_v2 }
  0x1d   :  { %1159 = vmatprep.subr.bf16.mxu0 %v1424_v0 }
  0x1e   :  { %1144 = vmatpush3.bf16.msra.mxu1 %v1535_v14 }
  0x1f   :  { %1169 = vmatprep.subr.bf16.mxu1 %v1424_v0 }
  0x20   :  { %1160 = vmatpush3.bf16.msra.mxu0 %v1513_v12 }
  0x21   :  { %1146 = vmatmul.mubr.bf16.vlgmr.msra.gmra.mrb[0].mxu1 %v1425_v2  ;;  %1161 = vmatprep.subr.bf16.mxu0 %v1424_v0 }
  0x22   :  { %1170 = vmatpush3.bf16.msra.mxu1 %v1460_v1  ;;  %1185 = vmatprep.mubr.msk.bf16.mxu1 %vm1426_vm0, %v1424_v0 }
  0x23   :  { %1171 = vmatprep.subr.bf16.mxu1 %v1424_v0  ;;  %1004 = vmatmul.mubr.msk.bf16.gmra.mrb[12].mxu0 %vm133_vm1, %v1353_v42 }
  0x24   :  { %1162 = vmatpush3.bf16.msra.mxu0 %v1523_v13  ;;  %1165 = vmatprep.mubr.msk.bf16.mxu0 %vm1426_vm0, %v1424_v0 }
  0x25   :  { %1163 = vmatprep.subr.bf16.mxu0 %v1424_v0 }
  0x26   :  { %1172 = vmatpush3.bf16.msra.mxu1 %v1469_v3 }
  0x27   :  { %1173 = vmatprep.subr.bf16.mxu1 %v1424_v0 }
  0x28   :  { %1164 = vmatpush3.bf16.msra.mxu0 %v1535_v14 }
  0x29   :  { %1189 = vmatprep.subr.bf16.mxu0 %v1424_v0 }
  0x2a   :  { %1174 = vmatpush3.bf16.msra.mxu1 %v1475_v4 }
  0x2b   :  { %1175 = vmatprep.subr.bf16.mxu1 %v1424_v0 }
  0x2e   :  { %1176 = vmatpush3.bf16.msra.mxu1 %v1495_v9 }
  0x2f   :  { %1177 = vmatprep.subr.bf16.mxu1 %v1424_v0 }
  0x32   :  { %1178 = vmatpush3.bf16.msra.mxu1 %v1504_v11 }
  0x33   :  { %1179 = vmatprep.subr.bf16.mxu1 %v1424_v0 }
  0x36   :  { %1180 = vmatpush3.bf16.msra.mxu1 %v1513_v12 }
  0x37   :  { %1181 = vmatprep.subr.bf16.mxu1 %v1424_v0 }
  0x3a   :  { %1182 = vmatpush3.bf16.msra.mxu1 %v1523_v13 }
  0x3b   :  { %1183 = vmatprep.subr.bf16.mxu1 %v1424_v0 }
  0x3e   :  { %1184 = vmatpush3.bf16.msra.mxu1 %v1535_v14 }
  0x3f   :  { %1209 = vmatprep.subr.bf16.mxu1 %v1424_v0 }
  0xde   :  { %v180_v16 = vpop.f32.mrb[0].mxu0 }
  0xdf   :  { %v182_v17 = vpop.f32.mrb[1].mxu0  ;;  %v181_v24 = vadd.f32 %v180_v16, %v1580_v23 }
  0xe0   :  { %v1569_v18 = vpop.f32.mrb[2].mxu0 }
  0xe1   :  { %v185_v20 = vpop.f32.mrb[3].mxu0  ;;  %v184_v2 = vadd.f32 %v1569_v18, %v1580_v23 }
  0xe6   :  { %v1609_v49 = vpop.f32.mrb[4].mxu0 }
  0xe7   :  { %v190_v50 = vpop.f32.mrb[5].mxu0  ;;  %v189_v33 = vadd.f32 %v1609_v49, %v1580_v23 }
  0xe8   :  { %v1611_v51 = vpop.f32.mrb[6].mxu0 }
  0xe9   :  { %v193_v52 = vpop.f32.mrb[7].mxu0 }
  0xee   :  { %v1613_v53 = vpop.f32.mrb[8].mxu0 }
  0xef   :  { %v198_v54 = vpop.f32.mrb[9].mxu0 }
  0xf0   :  { %v1615_v55 = vpop.f32.mrb[10].mxu0 }
  0xf1   :  { %v201_v56 = vpop.f32.mrb[11].mxu0 }
  0xf4   :  { %v301_v25 = vpop.f32.mrb[0].mxu1 }
  0xf5   :  { %v307_v26 = vadd.f32 %v301_v25, %v181_v24  ;;  %v1147_v27 = vpop.f32.mrb[1].mxu1 }
  0xf6   :  { %v304_v28 = vpop.f32.mrb[2].mxu1  ;;  %v1617_v57 = vpop.f32.mrb[12].mxu0 }
  0xf7   :  { %v1013_v29 = vmul.f32 -1.442695, %v307_v26  ;;  %v1148_v30 = vpop.f32.mrb[3].mxu1  ;;  %v206_v58 = vpop.f32.mrb[13].mxu0 }
  0xf8   :  { %v1619_v59 = vpop.f32.mrb[14].mxu0 }
  0xf9   :  { %1370 = vpow2.f32 %v1013_v29  ;;  %v1621_v60 = vpop.f32.mrb[15].mxu0 }
 0x103   :  { %v1371_v31 = vpop.eup %1370 }
 0x104   :  { %v311_v32 = vadd.f32 1.0, %v1371_v31 }
 0x106   :  { %1372 = vrcp.f32 %v311_v32 }
 0x110   :  { %v1373_v36 = vpop.eup %1372 }
 0x111   :  { %v314_v38 = vmul.f32 %v1373_v36, %v1583_v35 }
 0x113   :  { %v315_v39 = vadd.f32 %v314_v38, %v1586_v37 }
 0x115   :  { %317 = vrot.lane.b32.xlu0 %v315_v39, %s1428_s16  ;;  %v316_v45 = vmul.f32 0.0, %v315_v39 }
 0x119   :  { %319 = vrot.lane.b32.xlu0 %v315_v39, %s1429_s17 }
 0x187   :  { %v318_v43 = vpop.permute.xlu0 %317 }
 0x18b   :  { %v320_v44 = vpop.permute.xlu0 %319 }
 0x18c   :  { %v321_v46 = vmul.f32 %v320_v44, %v318_v43 }
 0x18e   :  { %v322_v47 = vadd.f32 %v321_v46, %v316_v45 }
 0x190   :  { %1374 = vtanh.f32 %v322_v47 }
 0x19a   :  { %v1375_v48 = vpop.eup %1374 }
 0x19b   :  { %324 = vrot.lane.b32.xlu1 %v1375_v48, %s1430_s24 }
 0x20d   :  { %v325_v61 = vpop.permute.xlu1 %324 }
 0x20e   :  { %v326_v62 = vmul.f32 %v325_v61, %v315_v39 }
 0x210   :  { %v327_v63 = vpack.c.bf16 %v326_v62, %v326_v62  ;;  %v192_v62 = vadd.f32 %v1611_v51, %v1580_v23 }
 0x212   :  { %1166 = vmatmul.mubr.bf16.vlgmr.msra.gmra.mrb[16].mxu0 %v327_v63 }
 0x213   :  { %1190 = vmatpush3.bf16.msra.mxu0 %v1460_v1  ;;  %1205 = vmatprep.mubr.msk.bf16.mxu0 %vm1426_vm0, %v1424_v0 }
 0x214   :  { %1191 = vmatprep.subr.bf16.mxu0 %v1424_v0 }
 0x217   :  { %1192 = vmatpush3.bf16.msra.mxu0 %v1469_v3 }
 0x218   :  { %1193 = vmatprep.subr.bf16.mxu0 %v1424_v0 }
 0x21b   :  { %1194 = vmatpush3.bf16.msra.mxu0 %v1475_v4 }
 0x21c   :  { %1195 = vmatprep.subr.bf16.mxu0 %v1424_v0 }
 0x21f   :  { %1196 = vmatpush3.bf16.msra.mxu0 %v1495_v9 }
 0x220   :  { %1197 = vmatprep.subr.bf16.mxu0 %v1424_v0 }
 0x223   :  { %1198 = vmatpush3.bf16.msra.mxu0 %v1504_v11 }
 0x224   :  { %1199 = vmatprep.subr.bf16.mxu0 %v1424_v0 }
 0x227   :  { %1200 = vmatpush3.bf16.msra.mxu0 %v1513_v12 }
 0x228   :  { %1201 = vmatprep.subr.bf16.mxu0 %v1424_v0 }
 0x22b   :  { %1202 = vmatpush3.bf16.msra.mxu0 %v1523_v13 }
 0x22c   :  { %1203 = vmatprep.subr.bf16.mxu0 %v1424_v0 }
 0x22f   :  { %1204 = vmatpush3.bf16.msra.mxu0 %v1535_v14 }
 0x230   :  { %1229 = vmatprep.subr.bf16.mxu0 %v1424_v0 }
 0x2e5   :  { %v362_v5 = vpop.f32.mrb[16].mxu0 }
 0x2e6   :  { %v368_v6 = vadd.f32 %v362_v5, %v184_v2  ;;  %v1167_v7 = vpop.f32.mrb[17].mxu0 }
 0x2e7   :  { %v365_v8 = vpop.f32.mrb[18].mxu0 }
 0x2e8   :  { %v1014_v10 = vmul.f32 -1.442695, %v368_v6  ;;  %v1168_v15 = vpop.f32.mrb[19].mxu0 }
 0x2ea   :  { %1376 = vpow2.f32 %v1014_v10 }
 0x2f4   :  { %v1377_v16 = vpop.eup %1376 }
 0x2f5   :  { %v372_v17 = vadd.f32 1.0, %v1377_v16 }
 0x2f7   :  { %1378 = vrcp.f32 %v372_v17 }
 0x301   :  { %v1379_v20 = vpop.eup %1378 }
 0x302   :  { %v375_v21 = vmul.f32 %v1379_v20, %v1583_v35 }
 0x304   :  { %v376_v24 = vadd.f32 %v375_v21, %v1586_v37 }
 0x306   :  { %380 = vrot.lane.b32.xlu0 %v376_v24, %s1429_s17  ;;  %378 = vrot.lane.b32.xlu1 %v376_v24, %s1428_s16  ;;  %v377_v26 = vmul.f32 %v376_v24, %v322_v47 }
 0x378   :  { %v381_v18 = vpop.permute.xlu0 %380  ;;  %v379_v25 = vpop.permute.xlu1 %378 }
 0x379   :  { %v382_v27 = vmul.f32 %v381_v18, %v379_v25 }
 0x37b   :  { %v383_v28 = vadd.f32 %v382_v27, %v377_v26 }
 0x37d   :  { %1380 = vtanh.f32 %v383_v28 }
 0x387   :  { %v1381_v29 = vpop.eup %1380 }
 0x388   :  { %385 = vrot.lane.b32.xlu1 %v1381_v29, %s1430_s24 }
 0x3fa   :  { %v386_v30 = vpop.permute.xlu1 %385 }
 0x3fb   :  { %v387_v31 = vmul.f32 %v386_v30, %v376_v24  ;;  %v197_v30 = vadd.f32 %v1613_v53, %v1580_v23 }
 0x3fd   :  { %v388_v32 = vpack.c.bf16 %v387_v31, %v387_v31 }
 0x3ff   :  { %1186 = vmatmul.mubr.bf16.vlgmr.msra.gmra.mrb[4].mxu1 %v388_v32 }
 0x400   :  { %1210 = vmatpush3.bf16.msra.mxu1 %v1460_v1  ;;  %1225 = vmatprep.mubr.msk.bf16.mxu1 %vm1426_vm0, %v1424_v0 }
 0x401   :  { %1211 = vmatprep.subr.bf16.mxu1 %v1424_v0 }
 0x404   :  { %1212 = vmatpush3.bf16.msra.mxu1 %v1469_v3 }
 0x405   :  { %1213 = vmatprep.subr.bf16.mxu1 %v1424_v0 }
 0x408   :  { %1214 = vmatpush3.bf16.msra.mxu1 %v1475_v4 }
 0x409   :  { %1215 = vmatprep.subr.bf16.mxu1 %v1424_v0 }
 0x40c   :  { %1216 = vmatpush3.bf16.msra.mxu1 %v1495_v9 }
 0x40d   :  { %1217 = vmatprep.subr.bf16.mxu1 %v1424_v0 }
 0x410   :  { %1218 = vmatpush3.bf16.msra.mxu1 %v1504_v11 }
 0x411   :  { %1219 = vmatprep.subr.bf16.mxu1 %v1424_v0 }
 0x414   :  { %1220 = vmatpush3.bf16.msra.mxu1 %v1513_v12 }
 0x415   :  { %1221 = vmatprep.subr.bf16.mxu1 %v1424_v0 }
 0x418   :  { %1222 = vmatpush3.bf16.msra.mxu1 %v1523_v13 }
 0x419   :  { %1223 = vmatprep.subr.bf16.mxu1 %v1424_v0 }
 0x41c   :  { %1224 = vmatpush3.bf16.msra.mxu1 %v1535_v14 }
 0x41d   :  { %1249 = vmatprep.subr.bf16.mxu1 %v1424_v0 }
 0x4d2   :  { %v423_v34 = vpop.f32.mrb[4].mxu1 }
 0x4d3   :  { %v429_v36 = vadd.f32 %v423_v34, %v189_v33  ;;  %v1187_v38 = vpop.f32.mrb[5].mxu1 }
 0x4d4   :  { %v426_v39 = vpop.f32.mrb[6].mxu1 }
 0x4d5   :  { %v1015_v40 = vmul.f32 -1.442695, %v429_v36  ;;  %v1188_v41 = vpop.f32.mrb[7].mxu1 }
 0x4d7   :  { %1382 = vpow2.f32 %v1015_v40 }
 0x4e1   :  { %v1383_v42 = vpop.eup %1382 }
 0x4e2   :  { %v433_v43 = vadd.f32 1.0, %v1383_v42 }
 0x4e4   :  { %1384 = vrcp.f32 %v433_v43 }
 0x4ee   :  { %v1385_v44 = vpop.eup %1384 }
 0x4ef   :  { %v436_v45 = vmul.f32 %v1385_v44, %v1583_v35 }
 0x4f1   :  { %v437_v46 = vadd.f32 %v436_v45, %v1586_v37 }
 0x4f3   :  { %441 = vrot.lane.b32.xlu1 %v437_v46, %s1429_s17  ;;  %439 = vrot.lane.b32.xlu0 %v437_v46, %s1428_s16  ;;  %v438_v49 = vmul.f32 %v437_v46, %v383_v28 }
 0x565   :  { %v442_v47 = vpop.permute.xlu1 %441  ;;  %v440_v48 = vpop.permute.xlu0 %439 }
 0x566   :  { %v443_v50 = vmul.f32 %v442_v47, %v440_v48 }
 0x568   :  { %v444_v52 = vadd.f32 %v443_v50, %v438_v49 }
 0x56a   :  { %1386 = vtanh.f32 %v444_v52 }
 0x574   :  { %v1387_v54 = vpop.eup %1386 }
 0x575   :  { %446 = vrot.lane.b32.xlu0 %v1387_v54, %s1430_s24 }
 0x5e7   :  { %v447_v56 = vpop.permute.xlu0 %446 }
 0x5e8   :  { %v448_v58 = vmul.f32 %v447_v56, %v437_v46 }
 0x5ea   :  { %v449_v61 = vpack.c.bf16 %v448_v58, %v448_v58 }
 0x5ec   :  { %1206 = vmatmul.mubr.bf16.vlgmr.msra.gmra.mrb[20].mxu0 %v449_v61 }
 0x5ed   :  { %1230 = vmatpush3.bf16.msra.mxu0 %v1460_v1  ;;  %1245 = vmatprep.mubr.msk.bf16.mxu0 %vm1426_vm0, %v1424_v0 }
 0x5ee   :  { %1231 = vmatprep.subr.bf16.mxu0 %v1424_v0 }
 0x5f1   :  { %1232 = vmatpush3.bf16.msra.mxu0 %v1469_v3 }
 0x5f2   :  { %1233 = vmatprep.subr.bf16.mxu0 %v1424_v0 }
 0x5f5   :  { %1234 = vmatpush3.bf16.msra.mxu0 %v1475_v4 }
 0x5f6   :  { %1235 = vmatprep.subr.bf16.mxu0 %v1424_v0 }
 0x5f9   :  { %1236 = vmatpush3.bf16.msra.mxu0 %v1495_v9 }
 0x5fa   :  { %1237 = vmatprep.subr.bf16.mxu0 %v1424_v0 }
 0x5fd   :  { %1238 = vmatpush3.bf16.msra.mxu0 %v1504_v11 }
 0x5fe   :  { %1239 = vmatprep.subr.bf16.mxu0 %v1424_v0 }
 0x601   :  { %1240 = vmatpush3.bf16.msra.mxu0 %v1513_v12 }
 0x602   :  { %1241 = vmatprep.subr.bf16.mxu0 %v1424_v0 }
 0x605   :  { %1242 = vmatpush3.bf16.msra.mxu0 %v1523_v13 }
 0x606   :  { %1243 = vmatprep.subr.bf16.mxu0 %v1424_v0 }
 0x609   :  { %1244 = vmatpush3.bf16.msra.mxu0 %v1535_v14 }
 0x60a   :  { %1269 = vmatprep.subr.bf16.mxu0 %v1424_v0 }
 0x6bf   :  { %v484_v63 = vpop.f32.mrb[20].mxu0 }
 0x6c0   :  { %v490_v2 = vadd.f32 %v484_v63, %v192_v62  ;;  %v1207_v5 = vpop.f32.mrb[21].mxu0 }
 0x6c1   :  { %v487_v6 = vpop.f32.mrb[22].mxu0 }
 0x6c2   :  { %v1016_v7 = vmul.f32 -1.442695, %v490_v2  ;;  %v1208_v8 = vpop.f32.mrb[23].mxu0 }
 0x6c4   :  { %1388 = vpow2.f32 %v1016_v7 }
 0x6ce   :  { %v1389_v10 = vpop.eup %1388 }
 0x6cf   :  { %v494_v15 = vadd.f32 1.0, %v1389_v10 }
 0x6d1   :  { %1390 = vrcp.f32 %v494_v15  ;;  %v205_v15 = vadd.f32 %v1617_v57, %v1580_v23 }
 0x6db   :  { %v1391_v16 = vpop.eup %1390 }
 0x6dc   :  { %v497_v17 = vmul.f32 %v1391_v16, %v1583_v35 }
 0x6de   :  { %v498_v20 = vadd.f32 %v497_v17, %v1586_v37 }
 0x6e0   :  { %502 = vrot.lane.b32.xlu0 %v498_v20, %s1429_s17  ;;  %500 = vrot.lane.b32.xlu1 %v498_v20, %s1428_s16  ;;  %v499_v24 = vmul.f32 %v498_v20, %v444_v52 }
 0x752   :  { %v503_v51 = vpop.permute.xlu0 %502  ;;  %v501_v21 = vpop.permute.xlu1 %500 }
 0x753   :  { %v504_v18 = vmul.f32 %v503_v51, %v501_v21 }
 0x755   :  { %v505_v25 = vadd.f32 %v504_v18, %v499_v24 }
 0x757   :  { %1392 = vtanh.f32 %v505_v25 }
 0x761   :  { %v1393_v26 = vpop.eup %1392 }
 0x762   :  { %507 = vrot.lane.b32.xlu1 %v1393_v26, %s1430_s24 }
 0x7d4   :  { %v508_v27 = vpop.permute.xlu1 %507 }
 0x7d5   :  { %v509_v28 = vmul.f32 %v508_v27, %v498_v20 }
 0x7d7   :  { %v510_v29 = vpack.c.bf16 %v509_v28, %v509_v28 }
 0x7d9   :  { %1226 = vmatmul.mubr.bf16.vlgmr.msra.gmra.mrb[8].mxu1 %v510_v29 }
 0x7da   :  { %1250 = vmatpush3.bf16.msra.mxu1 %v1460_v1  ;;  %1265 = vmatprep.mubr.msk.bf16.mxu1 %vm1426_vm0, %v1424_v0 }
 0x7db   :  { %1251 = vmatprep.subr.bf16.mxu1 %v1424_v0 }
 0x7de   :  { %1252 = vmatpush3.bf16.msra.mxu1 %v1469_v3 }
 0x7df   :  { %1253 = vmatprep.subr.bf16.mxu1 %v1424_v0 }
 0x7e2   :  { %1254 = vmatpush3.bf16.msra.mxu1 %v1475_v4 }
 0x7e3   :  { %1255 = vmatprep.subr.bf16.mxu1 %v1424_v0 }
 0x7e6   :  { %1256 = vmatpush3.bf16.msra.mxu1 %v1495_v9 }
 0x7e7   :  { %1257 = vmatprep.subr.bf16.mxu1 %v1424_v0 }
 0x7ea   :  { %1258 = vmatpush3.bf16.msra.mxu1 %v1504_v11 }
 0x7eb   :  { %1259 = vmatprep.subr.bf16.mxu1 %v1424_v0 }
 0x7ee   :  { %1260 = vmatpush3.bf16.msra.mxu1 %v1513_v12 }
 0x7ef   :  { %1261 = vmatprep.subr.bf16.mxu1 %v1424_v0 }
 0x7f2   :  { %1262 = vmatpush3.bf16.msra.mxu1 %v1523_v13 }
 0x7f3   :  { %1263 = vmatprep.subr.bf16.mxu1 %v1424_v0 }
 0x7f6   :  { %1264 = vmatpush3.bf16.msra.mxu1 %v1535_v14 }
 0x7f7   :  { %1289 = vmatprep.subr.bf16.mxu1 %v1424_v0 }
 0x8ac   :  { %v545_v31 = vpop.f32.mrb[8].mxu1 }
 0x8ad   :  { %v551_v32 = vadd.f32 %v545_v31, %v197_v30  ;;  %v1227_v33 = vpop.f32.mrb[9].mxu1 }
 0x8ae   :  { %v548_v34 = vpop.f32.mrb[10].mxu1 }
 0x8af   :  { %v1017_v36 = vmul.f32 -1.442695, %v551_v32  ;;  %v1228_v38 = vpop.f32.mrb[11].mxu1 }
 0x8b1   :  { %1394 = vpow2.f32 %v1017_v36 }
 0x8bb   :  { %v1395_v39 = vpop.eup %1394 }
 0x8bc   :  { %v555_v40 = vadd.f32 1.0, %v1395_v39  ;;  %v89_v39 = vsub.s32 1, %v1571_v19 }
 0x8be   :  { %1396 = vrcp.f32 %v555_v40  ;;  %v90_v40 = vrot.slane %v1577_v22, %v89_v39 }
 0x8c8   :  { %v1397_v41 = vpop.eup %1396 }
 0x8c9   :  { %v558_v42 = vmul.f32 %v1397_v41, %v1583_v35  ;;  %v210_v41 = vadd.f32 %v1621_v60, %v90_v40 }
 0x8cb   :  { %v559_v43 = vadd.f32 %v558_v42, %v1586_v37  ;;  %v1021_v42 = vmul.f32 -1.442695, %v210_v41 }
 0x8cd   :  { %563 = vrot.lane.b32.xlu1 %v559_v43, %s1429_s17  ;;  %561 = vrot.lane.b32.xlu0 %v559_v43, %s1428_s16  ;;  %v560_v45 = vmul.f32 %v559_v43, %v505_v25 }
 0x93f   :  { %v564_v53 = vpop.permute.xlu1 %563  ;;  %v562_v44 = vpop.permute.xlu0 %561 }
 0x940   :  { %v565_v46 = vmul.f32 %v564_v53, %v562_v44 }
 0x942   :  { %v566_v47 = vadd.f32 %v565_v46, %v560_v45 }
 0x944   :  { %1398 = vtanh.f32 %v566_v47 }
 0x94e   :  { %v1399_v48 = vpop.eup %1398 }
 0x94f   :  { %568 = vrot.lane.b32.xlu0 %v1399_v48, %s1430_s24 }
 0x9c1   :  { %v569_v49 = vpop.permute.xlu0 %568 }
 0x9c2   :  { %v570_v50 = vmul.f32 %v569_v49, %v559_v43  ;;  %v208_v43 = vadd.f32 %v1619_v59, %v1580_v23 }
 0x9c4   :  { %v571_v52 = vpack.c.bf16 %v570_v50, %v570_v50 }
 0x9c6   :  { %1246 = vmatmul.mubr.bf16.vlgmr.msra.gmra.mrb[24].mxu0 %v571_v52 }
 0x9c7   :  { %1270 = vmatpush3.bf16.msra.mxu0 %v1460_v1  ;;  %1285 = vmatprep.mubr.msk.bf16.mxu0 %vm1426_vm0, %v1424_v0  ;;  %v200_v1 = vadd.f32 %v1615_v55, %v1580_v23 }
 0x9c8   :  { %1271 = vmatprep.subr.bf16.mxu0 %v1424_v0 }
 0x9cb   :  { %1272 = vmatpush3.bf16.msra.mxu0 %v1469_v3 }
 0x9cc   :  { %1273 = vmatprep.subr.bf16.mxu0 %v1424_v0 }
 0x9cf   :  { %1274 = vmatpush3.bf16.msra.mxu0 %v1475_v4 }
 0x9d0   :  { %1275 = vmatprep.subr.bf16.mxu0 %v1424_v0 }
 0x9d3   :  { %1276 = vmatpush3.bf16.msra.mxu0 %v1495_v9 }
 0x9d4   :  { %1277 = vmatprep.subr.bf16.mxu0 %v1424_v0 }
 0x9d7   :  { %1278 = vmatpush3.bf16.msra.mxu0 %v1504_v11 }
 0x9d8   :  { %1279 = vmatprep.subr.bf16.mxu0 %v1424_v0 }
 0x9db   :  { %1280 = vmatpush3.bf16.msra.mxu0 %v1513_v12 }
 0x9dc   :  { %1281 = vmatprep.subr.bf16.mxu0 %v1424_v0 }
 0x9df   :  { %1282 = vmatpush3.bf16.msra.mxu0 %v1523_v13 }
 0x9e0   :  { %1283 = vmatprep.subr.bf16.mxu0 %v1424_v0 }
 0x9e3   :  { %1284 = vmatpush3.bf16.msra.mxu0 %v1535_v14 }
 0x9e4   :  { %1309 = vmatprep.subr.bf16.mxu0 %v1424_v0 }
 0xa99   :  { %v606_v3 = vpop.f32.mrb[24].mxu0 }
 0xa9a   :  { %v612_v4 = vadd.f32 %v606_v3, %v200_v1  ;;  %v1247_v9 = vpop.f32.mrb[25].mxu0 }
 0xa9b   :  { %v609_v11 = vpop.f32.mrb[26].mxu0  ;;  %v1357_v9 = vld [vmem:[%s1858_s2 + $0x88] sm:$0xff]  }
 0xa9c   :  { %v1018_v54 = vmul.f32 -1.442695, %v612_v4  ;;  %v1248_v56 = vpop.f32.mrb[27].mxu0  ;;  %v1354_v4 = vld [vmem:[%s1858_s2 + $0x40] sm:$0xff]   ;;  %v1358_v11 = vld [vmem:[%s1858_s2 + $0x50] sm:$0xff]  }
 0xa9d   :  { %v1360_v56 = vld [vmem:[%s1858_s2 + $0x58] sm:$0xff]  }
 0xa9e   :  { %1400 = vpow2.f32 %v1018_v54  ;;  %v1359_v54 = vld [vmem:[%s1858_s2 + $0x90] sm:$0xff]  }
 0xaa8   :  { %v1401_v12 = vpop.eup %1400 }
 0xaa9   :  { %v616_v58 = vadd.f32 1.0, %v1401_v12  ;;  %v1361_v12 = vld [vmem:[%s1858_s2 + $0x98] sm:$0xff]  }
 0xaab   :  { %1402 = vrcp.f32 %v616_v58  ;;  %v1362_v58 = vld [vmem:[%s1858_s2 + $0x60] sm:$0xff]  }
 0xab5   :  { %v1403_v13 = vpop.eup %1402 }
 0xab6   :  { %v619_v61 = vmul.f32 %v1403_v13, %v1583_v35  ;;  %v1363_v13 = vld [vmem:[%s1858_s2 + $0xa0] sm:$0xff]  }
 0xab8   :  { %v620_v14 = vadd.f32 %v619_v61, %v1586_v37  ;;  %v1364_v61 = vld [vmem:[%s1858_s2 + $0x68] sm:$0xff]  }
 0xaba   :  { %624 = vrot.lane.b32.xlu0 %v620_v14, %s1429_s17  ;;  %622 = vrot.lane.b32.xlu1 %v620_v14, %s1428_s16  ;;  %v621_v63 = vmul.f32 %v620_v14, %v566_v47 }
 0xb2c   :  { %v625_v55 = vpop.permute.xlu0 %624  ;;  %v623_v62 = vpop.permute.xlu1 %622 }
 0xb2d   :  { %v626_v2 = vmul.f32 %v625_v55, %v623_v62  ;;  %v1366_v55 = vld [vmem:[%s1858_s2 + $0x70] sm:$0xff]  }
 0xb2f   :  { %v627_v5 = vadd.f32 %v626_v2, %v621_v63 }
 0xb31   :  { %1404 = vtanh.f32 %v627_v5 }
 0xb3b   :  { %v1405_v6 = vpop.eup %1404 }
 0xb3c   :  { %629 = vrot.lane.b32.xlu1 %v1405_v6, %s1430_s24  ;;  %v1367_v6 = vld [vmem:[%s1858_s2 + $0xb0] sm:$0xff]  }
 0xbae   :  { %v630_v7 = vpop.permute.xlu1 %629 }
 0xbaf   :  { %v631_v8 = vmul.f32 %v630_v7, %v620_v14  ;;  %v1365_v14 = vld [vmem:[%s1858_s2 + $0xa8] sm:$0xff]   ;;  %v1368_v7 = vld [vmem:[%s1858_s2 + $0x78] sm:$0xff]  }
 0xbb1   :  { %v632_v10 = vpack.c.bf16 %v631_v8, %v631_v8 }
 0xbb3   :  { %1266 = vmatmul.mubr.bf16.vlgmr.msra.gmra.mrb[12].mxu1 %v632_v10 }
 0xbb4   :  { %1305 = vmatprep.mubr.msk.bf16.mxu1 %vm1426_vm0, %v1424_v0 }
 0xc86   :  { %v667_v16 = vpop.f32.mrb[12].mxu1 }
 0xc87   :  { %v673_v17 = vadd.f32 %v667_v16, %v205_v15  ;;  %v1267_v20 = vpop.f32.mrb[13].mxu1 }
 0xc88   :  { %v670_v51 = vpop.f32.mrb[14].mxu1  ;;  %v1369_v20 = vld [vmem:[%s1858_s2 + $0xb8] sm:$0xff]  }
 0xc89   :  { %v1019_v21 = vmul.f32 -1.442695, %v673_v17  ;;  %v1268_v24 = vpop.f32.mrb[15].mxu1 }
 0xc8b   :  { %1406 = vpow2.f32 %v1019_v21 }
 0xc95   :  { %v1407_v18 = vpop.eup %1406 }
 0xc96   :  { %v677_v25 = vadd.f32 1.0, %v1407_v18 }
 0xc98   :  { %1408 = vrcp.f32 %v677_v25 }
 0xca2   :  { %v1409_v26 = vpop.eup %1408 }
 0xca3   :  { %v680_v27 = vmul.f32 %v1409_v26, %v1583_v35 }
 0xca5   :  { %v681_v28 = vadd.f32 %v680_v27, %v1586_v37 }
 0xca7   :  { %685 = vrot.lane.b32.xlu1 %v681_v28, %s1429_s17  ;;  %683 = vrot.lane.b32.xlu0 %v681_v28, %s1428_s16  ;;  %v682_v30 = vmul.f32 %v681_v28, %v627_v5 }
 0xd19   :  { %v686_v57 = vpop.permute.xlu1 %685  ;;  %v684_v29 = vpop.permute.xlu0 %683 }
 0xd1a   :  { %v687_v31 = vmul.f32 %v686_v57, %v684_v29 }
 0xd1c   :  { %v1756_v32 = vadd.f32 %v687_v31, %v682_v30 }
 0xd1e   :  { %1410 = vtanh.f32 %v1756_v32 }
 0xd1f   :  { %1412 = vpow2.f32 %v1021_v42 }
 0xd28   :  { %v1411_v33 = vpop.eup %1410 }
 0xd29   :  { %690 = vrot.lane.b32.xlu0 %v1411_v33, %s1430_s24  ;;  %v1413_v49 = vpop.eup %1412 }
 0xd2a   :  { %v757_v50 = vadd.f32 1.0, %v1413_v49 }
 0xd9b   :  { %v691_v34 = vpop.permute.xlu0 %690 }
 0xd9c   :  { %v692_v36 = vmul.f32 %v691_v34, %v681_v28 }
 0xd9e   :  { %v693_v38 = vpack.c.bf16 %v692_v36, %v692_v36 }
 0xda0   :  { %1286 = vmatmul.mubr.bf16.vlgmr.msra.gmra.mrb[28].mxu0 %v693_v38 }
 0xda1   :  { %1325 = vmatprep.mubr.msk.bf16.mxu0 %vm1426_vm0, %v1424_v0  ;;  %1310 = vmatpush3.bf16.msra.mxu0 %v1354_v4 }
 0xda2   :  { %1311 = vmatprep.subr.bf16.mxu0 %v1424_v0 }
 0xe73   :  { %v728_v53 = vpop.f32.mrb[28].mxu0 }
 0xe74   :  { %v734_v44 = vadd.f32 %v728_v53, %v208_v43  ;;  %v1287_v45 = vpop.f32.mrb[29].mxu0 }
 0xe75   :  { %v731_v46 = vpop.f32.mrb[30].mxu0 }
 0xe76   :  { %v1020_v47 = vmul.f32 -1.442695, %v734_v44  ;;  %v1288_v48 = vpop.f32.mrb[31].mxu0 }
 0xe78   :  { %1414 = vpow2.f32 %v1020_v47 }
 0xe79   :  { %1416 = vrcp.f32 %v757_v50 }
 0xe82   :  { %v1415_v52 = vpop.eup %1414 }
 0xe83   :  { %v738_v19 = vadd.f32 1.0, %v1415_v52  ;;  %v1417_v22 = vpop.eup %1416 }
 0xe84   :  { %v760_v59 = vmul.f32 %v1417_v22, %v1583_v35 }
 0xe85   :  { %1418 = vrcp.f32 %v738_v19 }
 0xe86   :  { %v1777_v3 = vadd.f32 %v760_v59, %v1586_v37 }
 0xe88   :  { %v762_v16 = vmul.f32 0.0, %v1777_v3 }
 0xe8f   :  { %v1419_v60 = vpop.eup %1418 }
 0xe90   :  { %v741_v1 = vmul.f32 %v1419_v60, %v1583_v35  ;;  %v1355_v35 = vld [vmem:[%s1858_s2 + $0x80] sm:$0xff]  }
 0xe91   :  { %1290 = vmatpush3.bf16.msra.mxu1 %v1355_v35 }
 0xe92   :  { %v1769_v23 = vadd.f32 %v741_v1, %v1586_v37  ;;  %v1356_v37 = vld [vmem:[%s1858_s2 + $0x48] sm:$0xff]   ;;  %1291 = vmatprep.subr.bf16.mxu1 %v1424_v0 }
 0xe93   :  { %1312 = vmatpush3.bf16.msra.mxu0 %v1356_v37 }
 0xe94   :  { %746 = vrot.lane.b32.xlu0 %v1769_v23, %s1429_s17  ;;  %744 = vrot.lane.b32.xlu1 %v1769_v23, %s1428_s16  ;;  %v743_v2 = vmul.f32 %v1769_v23, %v1756_v32  ;;  %v1038_v32 = vld [vmem:[%s1861_s3 + $0x1] ss:$0 sm:$0xff] }
 0xe95   :  { %1292 = vmatpush3.bf16.msra.mxu1 %v1357_v9  ;;  %1313 = vmatprep.subr.bf16.mxu0 %v1424_v0 }
 0xe96   :  { %1293 = vmatprep.subr.bf16.mxu1 %v1424_v0 }
 0xe97   :  { %1314 = vmatpush3.bf16.msra.mxu0 %v1358_v11 }
 0xe98   :  { %765 = vrot.lane.b32.xlu0 %v1777_v3, %s1429_s17  ;;  %763 = vrot.lane.b32.xlu1 %v1777_v3, %s1428_s16 }
 0xe99   :  { %1294 = vmatpush3.bf16.msra.mxu1 %v1359_v54  ;;  %1315 = vmatprep.subr.bf16.mxu0 %v1424_v0 }
 0xe9a   :  { %1295 = vmatprep.subr.bf16.mxu1 %v1424_v0 }
 0xe9b   :  { %1316 = vmatpush3.bf16.msra.mxu0 %v1360_v56 }
 0xe9c   :  { %1317 = vmatprep.subr.bf16.mxu0 %v1424_v0 }
 0xe9d   :  { %1296 = vmatpush3.bf16.msra.mxu1 %v1361_v12 }
 0xe9e   :  { %1297 = vmatprep.subr.bf16.mxu1 %v1424_v0 }
 0xe9f   :  { %1318 = vmatpush3.bf16.msra.mxu0 %v1362_v58 }
 0xea0   :  { %1319 = vmatprep.subr.bf16.mxu0 %v1424_v0 }
 0xea1   :  { %1298 = vmatpush3.bf16.msra.mxu1 %v1363_v13 }
 0xea2   :  { %1299 = vmatprep.subr.bf16.mxu1 %v1424_v0 }
 0xea3   :  { %1320 = vmatpush3.bf16.msra.mxu0 %v1364_v61 }
 0xea4   :  { %1321 = vmatprep.subr.bf16.mxu0 %v1424_v0 }
 0xea5   :  { %1300 = vmatpush3.bf16.msra.mxu1 %v1365_v14 }
 0xea6   :  { %1301 = vmatprep.subr.bf16.mxu1 %v1424_v0 }
 0xea7   :  { %1322 = vmatpush3.bf16.msra.mxu0 %v1366_v55 }
 0xea8   :  { %1323 = vmatprep.subr.bf16.mxu0 %v1424_v0 }
 0xea9   :  { %1302 = vmatpush3.bf16.msra.mxu1 %v1367_v6 }
 0xeaa   :  { %1303 = vmatprep.subr.bf16.mxu1 %v1424_v0 }
 0xeab   :  { %1324 = vmatpush3.bf16.msra.mxu0 %v1368_v7 }
 0xead   :  { %1304 = vmatpush3.bf16.msra.mxu1 %v1369_v20 }
 0xf06   :  { %v747_v62 = vpop.permute.xlu0 %746  ;;  %v745_v63 = vpop.permute.xlu1 %744 }
 0xf07   :  { %v748_v5 = vmul.f32 %v747_v62, %v745_v63 }
 0xf09   :  { %v749_v8 = vadd.f32 %v748_v5, %v743_v2 }
 0xf0a   :  { %v766_v10 = vpop.permute.xlu0 %765  ;;  %v764_v15 = vpop.permute.xlu1 %763 }
 0xf0b   :  { %1420 = vtanh.f32 %v749_v8  ;;  %v767_v17 = vmul.f32 %v766_v10, %v764_v15 }
 0xf0d   :  { %v768_v51 = vadd.f32 %v767_v17, %v762_v16 }
 0xf0f   :  { %1422 = vtanh.f32 %v768_v51 }
 0xf15   :  { %v1421_v21 = vpop.eup %1420 }
 0xf16   :  { %751 = vrot.lane.b32.xlu1 %v1421_v21, %s1430_s24 }
 0xf19   :  { %v1423_v24 = vpop.eup %1422 }
 0xf1a   :  { %770 = vrot.lane.b32.xlu0 %v1423_v24, %s1430_s24 }
 0xf88   :  { %v752_v18 = vpop.permute.xlu1 %751 }
 0xf89   :  { %v753_v25 = vmul.f32 %v752_v18, %v1769_v23 }
 0xf8b   :  { %v773_v26 = vpack.c.bf16 %v753_v25, %v753_v25 }
 0xf8c   :  { %v771_v27 = vpop.permute.xlu0 %770 }
 0xf8d   :  { %v772_v0 = vmul.f32 %v771_v27, %v1777_v3  ;;  %1326 = vmatmul.mubr.bf16.vlgmr.msra.gmra.mrb[32].mxu0 %v773_v26 }
 0xf8f   :  { %v774_v28 = vpack.c.bf16 %v772_v0, %v772_v0 }
 0xf91   :  { %1306 = vmatmul.mubr.bf16.vlgmr.msra.gmra.mrb[16].mxu1 %v774_v28 }
0x1060   :  { %v945_v57 = vpop.f32.mrb[32].mxu0 }
0x1061   :  { %v1327_v29 = vpop.f32.mrb[33].mxu0 }
0x1062   :  { %v948_v30 = vpop.f32.mrb[34].mxu0 }
0x1063   :  { %v1328_v31 = vpop.f32.mrb[35].mxu0 }
0x1064   :  { %v857_v33 = vpop.f32.mrb[16].mxu1 }
0x1065   :  { %v946_v34 = vadd.f32 %v945_v57, %v857_v33  ;;  %v1307_v36 = vpop.f32.mrb[17].mxu1 }
0x1066   :  { %v860_v38 = vpop.f32.mrb[18].mxu1 }
0x1067   :  { %v955_v39 = vadd.f32 %v1038_v32, %v946_v34  ;;  %v1308_v40 = vpop.f32.mrb[19].mxu1 }
0x1069   :  { %956 = vst [vmem:[%s1862_s4] sm:$0xff] %v955_v39 }

</bundles_post_ra>
